<compile_context>
chip_gen: v5e
topology: v5e:2x2
jax: 0.10.0
libtpu: 0.0.40
codegen_flags: <defaults>
</compile_context>

<pallas_src>
import jax
import jax.numpy as jnp
from jax.experimental import pallas as pl
from jax.experimental.pallas import tpu as pltpu

_LANES = 128


def _to_i32(x):
    """Python int -> two's-complement int32 value (as a Python int)."""
    x &= 0xFFFFFFFF
    return x - (1 << 32) if x >= (1 << 31) else x


_FMIX_C1 = _to_i32(0x85EBCA6B)   # murmur3 fmix32 constants
_FMIX_C2 = _to_i32(0xC2B2AE35)


def _drop_attention_kernel(ints_ref, fparams_ref, s_ref, y_ref, psum_ref):
    """One (block_rows, 128) tile: sample keep-mask, write mask*s, emit kept-count.

    ints_ref    : SMEM (2,) int32   -> [seed, n_valid_elements]
    fparams_ref : SMEM (2,) float32 -> [a, b] with threshold = a*s + b in [0, 2^24]
    s_ref, y_ref: (block_rows, 128) tiles in the input dtype
    psum_ref    : SMEM (n_tiles,) float32 -> per-tile kept-element counts
    """
    i = pl.program_id(0)
    n_tiles = pl.num_programs(0)

    s = s_ref[...]
    br, lanes = s.shape
    sf = s.astype(jnp.float32)

    # Per-element drop threshold in the 24-bit integer domain:
    #   thresh = (s - min) / (max - min) * drop_prob * 2^24 = a*s + b
    thresh = sf * fparams_ref[0] + fparams_ref[1]

    # Counter-based PRNG: murmur3 fmix32 of (flat element index ^ seed).
    # Arithmetic shift + mask == logical shift, so everything is int32 VPU math.
    row = jax.lax.broadcasted_iota(jnp.int32, s.shape, 0)
    lane = jax.lax.broadcasted_iota(jnp.int32, s.shape, 1)
    idx = (i * br + row) * lanes + lane
    h = idx ^ ints_ref[0]
    h = (h ^ ((h >> 16) & 0xFFFF)) * _FMIX_C1
    h = (h ^ ((h >> 13) & 0x7FFFF)) * _FMIX_C2
    h = h ^ ((h >> 16) & 0xFFFF)
    u24 = ((h >> 8) & 0xFFFFFF).astype(jnp.float32)    # uniform over [0, 2^24)

    keep = u24 >= thresh                               # mask = 1 - bernoulli(T)

    # Unscaled masked output in the input dtype; the global numel/kept rescale is
    # one fused XLA pass in the wrapper once the total kept-count is known.
    y_ref[...] = jnp.where(keep, s, jnp.zeros_like(s))

    kept = keep.astype(jnp.float32)

    # Only the (possibly ragged / zero-padded) last tile pays for the valid mask.
    @pl.when(i < n_tiles - 1)
    def _():
        psum_ref[i] = jnp.sum(kept)

    @pl.when(i == n_tiles - 1)
    def _():
        valid = idx < ints_ref[1]
        psum_ref[i] = jnp.sum(jnp.where(valid, kept, 0.0))


def drop_attention_1d(s, key, *, drop_prob=0.1, training=True, block_rows=2048):
    """Training-mode forward of DropAttention1d.  Works for any input shape/dtype."""
    if not training or drop_prob <= 0:
        return s

    orig_shape = s.shape
    orig_dtype = s.dtype
    n = int(s.size)
    if n == 0:
        return s

    # Global min/max (one fused XLA reduction pass over s in its native dtype),
    # folded with drop_prob and 2^24 into an affine so the kernel only does a*s+b.
    # Degenerate max == min (all-equal input) maps to thresh = 0 (keep everything)
    # instead of the NaN the PyTorch reference would produce.
    s_min = jnp.min(s).astype(jnp.float32)
    s_max = jnp.max(s).astype(jnp.float32)
    rng = s_max - s_min
    a = jnp.where(rng > 0, jnp.float32(drop_prob * (1 << 24)) / rng, jnp.float32(0.0))
    b = -s_min * a
    fparams = jnp.stack([a, b]).astype(jnp.float32)

    seed = jax.random.randint(key, (), 0, jnp.iinfo(jnp.int32).max, dtype=jnp.int32)
    ints = jnp.stack([seed, jnp.int32(n)])

    # Lane-dense slab in the ORIGINAL dtype: pad only up to the next 128-lane row
    # (no pad when n % 128 == 0), never up to a block multiple; the last grid
    # block is ragged and Pallas bounds-clamps it.
    rows = -(-n // _LANES)
    flat = jnp.ravel(s)
    pad = rows * _LANES - n
    if pad:
        flat = jnp.pad(flat, (0, pad))
    slab = flat.reshape(rows, _LANES)

    if rows <= block_rows:
        br, n_tiles = rows, 1                      # single full-extent block
    else:
        br = max(32, (int(block_rows) // 32) * 32)  # 32 | br keeps any dtype packing happy
        n_tiles = -(-rows // br)

    grid_spec = pltpu.PrefetchScalarGridSpec(
        num_scalar_prefetch=2,
        grid=(n_tiles,),
        in_specs=[pl.BlockSpec((br, _LANES), lambda i, ints_r, fp_r: (i, 0))],
        out_specs=[
            pl.BlockSpec((br, _LANES), lambda i, ints_r, fp_r: (i, 0)),
            # Per-tile kept-counts: tiny untiled SMEM-resident output.
            pl.BlockSpec(memory_space=pltpu.MemorySpace.SMEM),
        ],
    )

    y_slab, psums = pl.pallas_call(
        _drop_attention_kernel,
        out_shape=(
            jax.ShapeDtypeStruct((rows, _LANES), orig_dtype),
            jax.ShapeDtypeStruct((n_tiles,), jnp.float32),
        ),
        grid_spec=grid_spec,
        compiler_params=pltpu.CompilerParams(
            dimension_semantics=("arbitrary",),
            vmem_limit_bytes=32 * 1024 * 1024,
        ),
    )(ints, fparams, slab)

    kept = jnp.sum(psums)
    # out = s * mask * numel / mask.sum(); guard the (astronomically unlikely)
    # all-dropped case instead of emitting inf like the PyTorch reference would.
    scale = jnp.where(kept > 0, jnp.float32(n) / kept, jnp.float32(0.0))
    # Single fused epilogue pass: read y (narrow dtype), scale, write orig dtype.
    out = (jnp.ravel(y_slab)[:n].astype(jnp.float32) * scale).astype(orig_dtype)
    return out.reshape(orig_shape)


if __name__ == "__main__":
    key = jax.random.PRNGKey(0)
    k_x, k_drop, k_x2 = jax.random.split(key, 3)

    # (batch, channels, length) 1-D attention map; 8000 elements -> 63 lane-rows.
    # block_rows=32 -> 2 tiles with a ragged last tile (exercises the tail path).
    B, C, L = 2, 8, 500
    x = jax.random.normal(k_x, (B, C, L), dtype=jnp.float32)

    out = drop_attention_1d(x, k_drop, drop_prob=0.1, training=True, block_rows=32)
    out = jax.block_until_ready(out)

    assert out.shape == x.shape and out.dtype == x.dtype
    assert bool(jnp.all(jnp.isfinite(out)))

    # Some (but not too many) elements must be dropped, and every kept element
    # must be scaled by the same factor numel / kept >= 1.
    nz = out != 0
    n_kept = int(jnp.sum(nz))
    assert 0 < x.size - n_kept < x.size // 2
    expected_scale = x.size / n_kept
    ratios = jnp.where(nz, out / jnp.where(nz, x, 1.0), expected_scale)
    assert bool(jnp.allclose(ratios, expected_scale, rtol=1e-5))

    # bf16 path keeps HBM I/O narrow and returns bf16 (single full-extent tile).
    xb = jax.random.normal(k_x2, (2, 4, 256), dtype=jnp.bfloat16)
    outb = jax.block_until_ready(drop_attention_1d(xb, k_drop, drop_prob=0.2))
    assert outb.shape == xb.shape and outb.dtype == jnp.bfloat16

    # Eval mode is the identity.
    out_eval = drop_attention_1d(x, k_drop, drop_prob=0.1, training=False)
    assert bool(jnp.array_equal(out_eval, x))

    print("KERNEL_OK")
</pallas_src>

<mosaic_0001>
module attributes {stable_mosaic.version = 11 : i64} {
  func.func @_drop_attention_kernel(%arg0: i32, %arg1: memref<2xi32, #tpu.memory_space<smem>>, %arg2: memref<2xf32, #tpu.memory_space<smem>>, %arg3: memref<32x128xf32, #tpu.memory_space<vmem>>, %arg4: memref<32x128xf32, #tpu.memory_space<vmem>>, %arg5: memref<2xf32, #tpu.memory_space<smem>>) attributes {dimension_semantics = [#tpu.dimension_semantics<arbitrary>], iteration_bounds = array<i64: 2>, scalar_prefetch = 2 : i64, scratch_operands = 0 : i64, tpu.core_type = #tpu.core_type<tc>, window_params = [{transform_indices = @transform_0, window_bounds = array<i64: 32, 128>}, {transform_indices = @transform_1, window_bounds = array<i64: 32, 128>}, {transform_indices = @transform_2, window_bounds = array<i64: 2>}]} {
    %c0 = arith.constant 0 : index
    %c0_0 = arith.constant 0 : index
    %0 = vector.load %arg3[%c0, %c0_0] : memref<32x128xf32, #tpu.memory_space<vmem>>, vector<32x128xf32>
    %c0_1 = arith.constant 0 : index
    %1 = memref.load %arg2[%c0_1] : memref<2xf32, #tpu.memory_space<smem>>
    %2 = vector.broadcast %1 : f32 to vector<32x128xf32>
    %3 = arith.mulf %0, %2 : vector<32x128xf32>
    %c1 = arith.constant 1 : index
    %4 = memref.load %arg2[%c1] : memref<2xf32, #tpu.memory_space<smem>>
    %5 = vector.broadcast %4 : f32 to vector<32x128xf32>
    %6 = arith.addf %3, %5 : vector<32x128xf32>
    %7 = tpu.iota {dimensions = array<i32: 0>} : vector<32x128xi32>
    %8 = tpu.iota {dimensions = array<i32: 1>} : vector<32x128xi32>
    %c32_i32 = arith.constant 32 : i32
    %9 = arith.muli %arg0, %c32_i32 : i32
    %10 = vector.broadcast %9 : i32 to vector<32x128xi32>
    %11 = arith.addi %10, %7 : vector<32x128xi32>
    %c128_i32 = arith.constant 128 : i32
    %12 = vector.broadcast %c128_i32 : i32 to vector<32x128xi32>
    %13 = arith.muli %11, %12 : vector<32x128xi32>
    %14 = arith.addi %13, %8 : vector<32x128xi32>
    %c0_2 = arith.constant 0 : index
    %15 = memref.load %arg1[%c0_2] : memref<2xi32, #tpu.memory_space<smem>>
    %16 = vector.broadcast %15 : i32 to vector<32x128xi32>
    %17 = arith.xori %14, %16 : vector<32x128xi32>
    %c16_i32 = arith.constant 16 : i32
    %18 = vector.broadcast %c16_i32 : i32 to vector<32x128xi32>
    %19 = arith.shrsi %17, %18 : vector<32x128xi32>
    %c65535_i32 = arith.constant 65535 : i32
    %20 = vector.broadcast %c65535_i32 : i32 to vector<32x128xi32>
    %21 = arith.andi %19, %20 : vector<32x128xi32>
    %22 = arith.xori %17, %21 : vector<32x128xi32>
    %c-2048144789_i32 = arith.constant -2048144789 : i32
    %23 = vector.broadcast %c-2048144789_i32 : i32 to vector<32x128xi32>
    %24 = arith.muli %22, %23 : vector<32x128xi32>
    %c13_i32 = arith.constant 13 : i32
    %25 = vector.broadcast %c13_i32 : i32 to vector<32x128xi32>
    %26 = arith.shrsi %24, %25 : vector<32x128xi32>
    %c524287_i32 = arith.constant 524287 : i32
    %27 = vector.broadcast %c524287_i32 : i32 to vector<32x128xi32>
    %28 = arith.andi %26, %27 : vector<32x128xi32>
    %29 = arith.xori %24, %28 : vector<32x128xi32>
    %c-1028477387_i32 = arith.constant -1028477387 : i32
    %30 = vector.broadcast %c-1028477387_i32 : i32 to vector<32x128xi32>
    %31 = arith.muli %29, %30 : vector<32x128xi32>
    %c16_i32_3 = arith.constant 16 : i32
    %32 = vector.broadcast %c16_i32_3 : i32 to vector<32x128xi32>
    %33 = arith.shrsi %31, %32 : vector<32x128xi32>
    %c65535_i32_4 = arith.constant 65535 : i32
    %34 = vector.broadcast %c65535_i32_4 : i32 to vector<32x128xi32>
    %35 = arith.andi %33, %34 : vector<32x128xi32>
    %36 = arith.xori %31, %35 : vector<32x128xi32>
    %c8_i32 = arith.constant 8 : i32
    %37 = vector.broadcast %c8_i32 : i32 to vector<32x128xi32>
    %38 = arith.shrsi %36, %37 : vector<32x128xi32>
    %c16777215_i32 = arith.constant 16777215 : i32
    %39 = vector.broadcast %c16777215_i32 : i32 to vector<32x128xi32>
    %40 = arith.andi %38, %39 : vector<32x128xi32>
    %41 = arith.sitofp %40 : vector<32x128xi32> to vector<32x128xf32>
    %42 = arith.cmpf oge, %41, %6 : vector<32x128xf32>
    %cst = arith.constant 0.000000e+00 : f32
    %43 = vector.broadcast %cst : f32 to vector<32x128xf32>
    %44 = arith.select %42, %0, %43 : vector<32x128xi1>, vector<32x128xf32>
    %c0_5 = arith.constant 0 : index
    %c0_6 = arith.constant 0 : index
    %45 = vector.load %arg4[%c0_5, %c0_6] : memref<32x128xf32, #tpu.memory_space<vmem>>, vector<32x128xf32>
    tpu.vector_store %arg4[%c0_5, %c0_6], %44 {strides = array<i32>} : memref<32x128xf32, #tpu.memory_space<vmem>>, vector<32x128xf32>,
    %46 = arith.extui %42 : vector<32x128xi1> to vector<32x128xi32>
    %47 = arith.sitofp %46 : vector<32x128xi32> to vector<32x128xf32>
    %c1_i32 = arith.constant 1 : i32
    %48 = arith.cmpi slt, %arg0, %c1_i32 : i32
    %49 = arith.extui %48 : i1 to i32
    %c0_i32 = arith.constant 0 : i32
    %50 = arith.cmpi ne, %49, %c0_i32 : i32
    scf.if %50 {
      %54 = vector.shape_cast %47 : vector<32x128xf32> to vector<1x32x128xf32>
      %cst_9 = arith.constant dense<0.000000e+00> : vector<1xf32>
      %55 = vector.multi_reduction <add>, %54, %cst_9 [1, 2] : vector<1x32x128xf32> to vector<1xf32>
      %56 = vector.shape_cast %55 : vector<1xf32> to vector<1x1x1xf32>
      %57 = vector.extract %56[0, 0, 0] : f32 from vector<1x1x1xf32>
      %58 = arith.index_cast %arg0 : i32 to index
      %59 = memref.load %arg5[%58] : memref<2xf32, #tpu.memory_space<smem>>
      memref.store %57, %arg5[%58] : memref<2xf32, #tpu.memory_space<smem>>
    } else {
    }
    %c1_i32_7 = arith.constant 1 : i32
    %51 = arith.cmpi eq, %arg0, %c1_i32_7 : i32
    %52 = arith.extui %51 : i1 to i32
    %c0_i32_8 = arith.constant 0 : i32
    %53 = arith.cmpi ne, %52, %c0_i32_8 : i32
    scf.if %53 {
      %c1_9 = arith.constant 1 : index
      %54 = memref.load %arg1[%c1_9] : memref<2xi32, #tpu.memory_space<smem>>
      %55 = vector.broadcast %54 : i32 to vector<32x128xi32>
      %56 = arith.cmpi slt, %14, %55 : vector<32x128xi32>
      %cst_10 = arith.constant 0.000000e+00 : f32
      %57 = vector.broadcast %cst_10 : f32 to vector<32x128xf32>
      %58 = arith.select %56, %47, %57 : vector<32x128xi1>, vector<32x128xf32>
      %59 = vector.shape_cast %58 : vector<32x128xf32> to vector<1x32x128xf32>
      %cst_11 = arith.constant dense<0.000000e+00> : vector<1xf32>
      %60 = vector.multi_reduction <add>, %59, %cst_11 [1, 2] : vector<1x32x128xf32> to vector<1xf32>
      %61 = vector.shape_cast %60 : vector<1xf32> to vector<1x1x1xf32>
      %62 = vector.extract %61[0, 0, 0] : f32 from vector<1x1x1xf32>
      %63 = arith.index_cast %arg0 : i32 to index
      %64 = memref.load %arg5[%63] : memref<2xf32, #tpu.memory_space<smem>>
      memref.store %62, %arg5[%63] : memref<2xf32, #tpu.memory_space<smem>>
    } else {
    }
    return
  }
  func.func @transform_0(%arg0: i32, %arg1: memref<2xi32, #tpu.memory_space<smem>>, %arg2: memref<2xf32, #tpu.memory_space<smem>>) -> (i32, i32) {
    %c0_i32 = arith.constant 0 : i32
    %c0_i32_0 = arith.constant 0 : i32
    return %arg0, %c0_i32 : i32, i32
  }
  func.func @transform_1(%arg0: i32, %arg1: memref<2xi32, #tpu.memory_space<smem>>, %arg2: memref<2xf32, #tpu.memory_space<smem>>) -> (i32, i32) {
    %c0_i32 = arith.constant 0 : i32
    %c0_i32_0 = arith.constant 0 : i32
    return %arg0, %c0_i32 : i32, i32
  }
  func.func @transform_2(%arg0: i32, %arg1: memref<2xi32, #tpu.memory_space<smem>>, %arg2: memref<2xf32, #tpu.memory_space<smem>>) -> i32 {
    %c0_i32 = arith.constant 0 : i32
    %c0_i32_0 = arith.constant 0 : i32
    return %c0_i32 : i32
  }
}

</mosaic_0001>

<bundles_post_ra>
// kernel: tpu_custom_call.1
= control target key start
LH: loop header
LB: loop body
LE: loop exit
PB: predicated region body
PF: predicated region fallthrough
CT: control target
= control target key end

     0   :  { %s716_s21 = smov [#allocation3]   ;;  %s717_s22 = smov [#allocation4]   ;;  %s934_s0 = inlined_call_operand.hbm [shape: s32[2], index: 0, kind: input, shape index: {}]   ;;  %s935_s2 = inlined_call_operand.hbm [shape: f32[63,128], index: 2, kind: input, shape index: {}]   ;;  %s936_s3 = inlined_call_operand.hbm [shape: f32[63,128], index: 3, kind: output, shape index: {0}]   ;;  %s937_s4 = inlined_call_operand.hbm [shape: f32[2], index: 4, kind: output, shape index: {1}]   ;;  %s938_s1 = inlined_call_operand.hbm [shape: f32[2], index: 1, kind: input, shape index: {}]  }
   0x1   :  { %s11_s17 = sshll.u32 %s934_s0, 4  ;;  %s16_s20 = sshll.u32 %s938_s1, 4  ;;  %s12_s17 = int_to_ptr.hbm [resolvable:$true] %s11_s17  ;;  %s17_s20 = int_to_ptr.hbm [resolvable:$true] %s16_s20 }
   0x2   :  { %14 = dma.hbm_to_smem %s12_s17, 16, %s716_s21, [#allocation2] }
   0x3   :  { %19 = dma.hbm_to_smem %s17_s20, 16, %s717_s22, [#allocation2] }
   0x4   :  { %686 = dma.done.wait [#allocation2], 32 }
   0x5   :  { %687 = vsyncadd [#allocation2], 4294967264 }
   0x6   :  { %22 = sfence }
   0x7   :  { %23 = vsyncpa [#allocation6], 0 }
   0x8   :  { %25 = vsyncpa [#allocation6 + $0x1], 0 }
   0x9   :  { %26 = vsyncpa [#allocation7], 0 }
   0xa   :  { %28 = vsyncpa [#allocation7 + $0x1], 0 }
   0xb   :  { %29 = vsyncpa [#allocation8], 0  ;;  %s755_s23 = smov 0   ;;  %s757_s0 = smov 0  }
   0xc   :  { %s759_s24 = smov 0   ;;  %s761_s1 = smov 0  }
   0xd LB: > { %s776_s25 = sadd.s32 4294967295, %s714_s1   ;;  %s461_s26 = sadd.s32 4294967294, %s714_s1   ;;  %s714_s1 = sphi %s761_s1, %s952_s1   ;;  %s710_s24 = sphi %s759_s24, %s951_s24   ;;  %s706_s0 = sphi %s757_s0, %s950_s0   ;;  %s702_s23 = sphi %s755_s23, %s949_s23  }
   0xe   : > { %s780_s27 = sadd.s32 1, %s714_s1   ;;  %s42_s28 = sadd.s32 1, %s710_s24 }
   0xf   : > { %s39_s29 = ssub.s32 %s714_s1, %s780_s27  ;;  %p49_p0 = scmp.ne.s32.totalorder %s710_s24, %s706_s0 }
  0x10   : > { %p40_p1 = scmp.eq.s32.totalorder %s39_s29, 0  ;;  %p50_p2 = scmp.eq.s32.totalorder %s714_s1, 0 }
  0x11   : > { %p55_p3 = scmp.ne.s32.totalorder %s706_s0, %s702_s23  ;;  %p56_p4 = scmp.eq.s32.totalorder %s776_s25, 0 }
  0x12   : > { %s792_s30 = scalar_select %p40_p1, %s710_s24, %s42_s28  }
  0x13   : > { %p794_p5 = por %p50_p2, %p49_p0  ;;  %p798_p6 = por %p56_p4, %p55_p3 }
  0x14   : > { %p939_p7 = scmp.eq.s32.totalorder %s776_s25, 1  ;;  %p85_p8 = scmp.eq.s32.totalorder %s461_s26, 1 }
  0x15   : > { %p530_p10 = scmp.lt.s32.totalorder %s714_s1, 2  ;;  %s126_s9 = sand.u32 1, %s710_s24  }
  0x16   : > { %p807_p11 = por %p939_p7, %p49_p0  ;;  %p811_p12 = por %p85_p8, %p55_p3 }
  0x17   : > { %s504_s10 = sshll.u32 %s714_s1, 5  ;;  %s464_s11 = sshll.u32 %s126_s9, 5 }
  0x18   : > { %s135_s14 = scalar_lea.hbm %s935_s2, %s504_s10  ;;  %s130_s16 = scalar_lea.vmem [#allocation5], %s464_s11 }
  0x19   : > { %s136_s15 = sshll.u32 %s135_s14, 4  ;;  %s138_s17 = sshll.u32 %s130_s16, 4  ;;  %s137_s15 = int_to_ptr.hbm [resolvable:$true] %s136_s15  ;;  %s139_s17 = int_to_ptr.vmem [resolvable:$true] %s138_s17 }
  0x1a   : > { %p822_p13 = pnand %p530_p10, %p794_p5  ;;  %p467_p0 = scmp.ge.s32.totalorder %s714_s1, 1 }
  0x1b   : > { %p146_p1 = scmp.lt.s32.totalorder %s714_s1, 3  ;;  %s127_s19 = scalar_lea.sflag [#allocation6], %s126_s9 }
  0x1c   : > { %s598_s20 = sshra.s32 %s137_s15, 4  ;;  %p602_p3 = pneg %p822_p13  ;;  %s599_s20 = int_to_ptr.hbm [resolvable:$true] %s598_s20 }
  0x1d   : > { %s600_s21 = scalar_lea.hbm %s599_s20, 32  ;;  %s605_s28 = scalar_lea.hbm %s935_s2, 64 }
  0x1e   : > { %p601_p2 = scmp.ne.s32.totalorder %s599_s20, %s600_s21  ;;  %p606_p5 = scmp.lt.s32.totalorder %s599_s20, %s935_s2 }
  0x1f   : > { %p607_p10 = scmp.lt.s32.totalorder %s605_s28, %s600_s21 }
  0x20   : > { %p603_p4 = pnand %p602_p3, %p601_p2 }
  0x21   : > { %p608_p9 = por %p607_p10, %p606_p5 }
  0x22   : > { %p604_p8 = pneg %p603_p4 }
  0x24   : > { %p609_p7 = pnand %p608_p9, %p604_p8 }
  0x26   : > { %612 = shalt.err (!%p609_p7)
}
  0x27   : > { %s718_s9 = smov 128   ;;  %s719_s10 = smov 8  }
  0x28   : > { %525 = dma.hbm_to_vmem [thread:$0]  (!%p822_p13), %s137_s15, 512, %s139_s17, %s127_s19, %s718_s9, %s718_s9, %s719_s10  }
  0x29   : > { %p147_p2 = pnand %p467_p0, %p146_p1 }
  0x2a   : > { %s843_s11 = sand.u32 (!%p147_p2), 1, %s706_s0  }
  0x2b   : > { %150 = sbr.rel (%p147_p2) target bundleno = 492 (0x1ec), region = 24  ;;  %s468_s12 = sshll.u32 (!%p147_p2), %s843_s11, 5 }
  0x2c   : > { %s153_s13 = scalar_lea.sflag (!%p147_p2), [#allocation6], %s843_s11  ;;  %s849_s14 = scalar_lea.vmem (!%p147_p2), [#allocation5], %s468_s12 }
  0x30   : > { %689 = dma.done.wait (%p798_p6), %s153_s13, 512  }
  0x31   : > { %691 = vsyncadd (%p798_p6), %s153_s13, 4294966784  ;;  %v196_v0 = vlaneseq  ;;  %s471_s15 = sshll.u32 %s776_s25, 5  ;;  %s217_s16 = sld [smem:[#allocation3]]  ;;  %v180_v37 = vld [vmem:[%s849_s14] sm:$0xff]  ;;  %v181_v43 = vld [vmem:[%s849_s14 + $0x8] sm:$0xff] }
  0x32   : > { %v204_v1 = vstv %s471_s15  ;;  %s184_s6 = sld [smem:[#allocation4]]  ;;  %v182_v49 = vld [vmem:[%s849_s14 + $0x10] sm:$0xff]  ;;  %v183_v59 = vld [vmem:[%s849_s14 + $0x18] sm:$0xff]  ;;  %s876_s18 = scalar_lea.vmem [#allocation9], %s468_s12 }
  0x33   : > { %v197_v2 = vshrl.u32 %v196_v0, 7  ;;  %v202_v3 = vand.u32 127, %v196_v0  ;;  %s470_s17 = sld [smem:[#allocation4 + $0x1]]  ;;  %p492_p6 = scmp.ge.s32.totalorder %s776_s25, 1 }
  0x34   : > { %s505_s19 = scalar_lea.smem (!%p492_p6), [#allocation10], %s714_s1 }
  0x35   : > { %v205_v4 = vadd.s32 %v204_v1, %v197_v2  ;;  %v198_v5 = vadd.s32 8, %v197_v2  ;;  %v199_v6 = vadd.s32 16, %v197_v2  ;;  %v200_v7 = vadd.s32 24, %v197_v2  ;;  %s506_s20 = scalar_lea.smem (!%p492_p6), %s505_s19, 4294967295 [#allocation10] }
  0x37   : > { %v209_v8 = vmul.u32 128, %v205_v4  ;;  %v206_v9 = vadd.s32 %v204_v1, %v198_v5  ;;  %v207_v10 = vadd.s32 %v204_v1, %v199_v6  ;;  %v208_v11 = vadd.s32 %v204_v1, %v200_v7 }
  0x38   : > { %v218_v13 = vstv %s217_s16  ;;  %v185_v38 = vstv %s184_s6 }
  0x39   : > { %v858_v12 = vadd.s32 %v209_v8, %v202_v3  ;;  %v210_v14 = vmul.u32 128, %v206_v9  ;;  %v211_v15 = vmul.u32 128, %v207_v10  ;;  %v212_v19 = vmul.u32 128, %v208_v11 }
  0x3a   : > { %v186_v47 = vmul.f32 %v185_v38, %v180_v37  ;;  %v191_v50 = vstv %s470_s17  ;;  %v187_v55 = vmul.f32 %v185_v38, %v181_v43  ;;  %v188_v57 = vmul.f32 %v185_v38, %v182_v49 }
  0x3b   : > { %v219_v16 = vxor.u32 %v218_v13, %v858_v12  ;;  %v861_v17 = vadd.s32 %v210_v14, %v202_v3  ;;  %v863_v18 = vadd.s32 %v211_v15, %v202_v3  ;;  %v867_v23 = vadd.s32 %v212_v19, %v202_v3 }
  0x3c   : > { %v192_v61 = vadd.f32 %v191_v50, %v186_v47  ;;  %v193_v3 = vadd.f32 %v191_v50, %v187_v55  ;;  %v189_v4 = vmul.f32 %v185_v38, %v183_v59  ;;  %v194_v6 = vadd.f32 %v191_v50, %v188_v57 }
  0x3d   : > { %v472_v20 = vshrl.u32 %v219_v16, 16  ;;  %v220_v21 = vxor.u32 %v218_v13, %v861_v17  ;;  %v221_v22 = vxor.u32 %v218_v13, %v863_v18  ;;  %v222_v27 = vxor.u32 %v218_v13, %v867_v23 }
  0x3e   : > { %v720_v10 = vmov 0.0  }
  0x3f   : > { %v231_v24 = vxor.u32 %v472_v20, %v219_v16  ;;  %v473_v25 = vshrl.u32 %v220_v21, 16  ;;  %v474_v26 = vshrl.u32 %v221_v22, 16  ;;  %v475_v31 = vshrl.u32 %v222_v27, 16 }
  0x40   : > { %v195_v16 = vadd.f32 %v191_v50, %v189_v4 }
  0x41   : > { %v235_v28 = vmul.u32 2246822507, %v231_v24  ;;  %v232_v29 = vxor.u32 %v473_v25, %v220_v21  ;;  %v233_v30 = vxor.u32 %v474_v26, %v221_v22  ;;  %v234_v35 = vxor.u32 %v475_v31, %v222_v27 }
  0x43   : > { %v476_v32 = vshrl.u32 %v235_v28, 13  ;;  %v236_v33 = vmul.u32 2246822507, %v232_v29  ;;  %v237_v34 = vmul.u32 2246822507, %v233_v30 }
  0x44   : > { %v238_v41 = vmul.u32 2246822507, %v234_v35 }
  0x45   : > { %v247_v36 = vxor.u32 %v476_v32, %v235_v28  ;;  %v477_v39 = vshrl.u32 %v236_v33, 13  ;;  %v478_v40 = vshrl.u32 %v237_v34, 13 }
  0x46   : > { %v479_v46 = vshrl.u32 %v238_v41, 13 }
  0x47   : > { %v251_v42 = vmul.u32 3266489909, %v247_v36  ;;  %v248_v44 = vxor.u32 %v477_v39, %v236_v33  ;;  %v249_v45 = vxor.u32 %v478_v40, %v237_v34 }
  0x48   : > { %v250_v53 = vxor.u32 %v479_v46, %v238_v41 }
  0x49   : > { %v480_v48 = vshrl.u32 %v251_v42, 16  ;;  %v252_v51 = vmul.u32 3266489909, %v248_v44  ;;  %v253_v52 = vmul.u32 3266489909, %v249_v45 }
  0x4a   : > { %v254_v60 = vmul.u32 3266489909, %v250_v53 }
  0x4b   : > { %v263_v54 = vxor.u32 %v480_v48, %v251_v42  ;;  %v481_v56 = vshrl.u32 %v252_v51, 16  ;;  %v482_v58 = vshrl.u32 %v253_v52, 16 }
  0x4c   : > { %v483_v1 = vshrl.u32 %v254_v60, 16 }
  0x4d   : > { %v484_v62 = vshrl.u32 %v263_v54, 8  ;;  %v264_v63 = vxor.u32 %v481_v56, %v252_v51  ;;  %v265_v0 = vxor.u32 %v482_v58, %v253_v52 }
  0x4e   : > { %v266_v8 = vxor.u32 %v483_v1, %v254_v60 }
  0x4f   : > { %v275_v2 = vcvt.s32.f32 %v484_v62  ;;  %v485_v5 = vshrl.u32 %v264_v63, 8  ;;  %v486_v7 = vshrl.u32 %v265_v0, 8 }
  0x50   : > { %v487_v15 = vshrl.u32 %v266_v8, 8 }
  0x51   : > { %vm279_vm0 = vcmp.ge.f32.partialorder %v275_v2, %v192_v61  ;;  %v276_v13 = vcvt.s32.f32 %v485_v5  ;;  %v277_v14 = vcvt.s32.f32 %v486_v7 }
  0x52   : > { %v283_v9 = vsel %vm279_vm0, %v180_v37, 0.0  ;;  %v488_v11 = vsel %vm279_vm0, 1.0, %v720_v10  ;;  %v278_v24 = vcvt.s32.f32 %v487_v15 }
  0x53   : > { %287 = vst [vmem:[%s876_s18] sm:$0xff] %v283_v9  ;;  %vm280_vm1 = vcmp.ge.f32.partialorder %v276_v13, %v193_v3  ;;  %vm281_vm2 = vcmp.ge.f32.partialorder %v277_v14, %v194_v6  ;;  %302 = sbr.rel (%p492_p6) target bundleno = 273 (0x111), region = 32 }
  0x54   : > { %v284_v19 = vsel %vm280_vm1, %v181_v43, 0.0  ;;  %v489_v20 = vsel %vm280_vm1, 1.0, %v720_v10  ;;  %v285_v21 = vsel %vm281_vm2, %v182_v49, 0.0  ;;  %v490_v22 = vsel %vm281_vm2, 1.0, %v720_v10 }
  0x55   : > { %288 = vst [vmem:[%s876_s18 + $0x8] sm:$0xff] %v284_v19  ;;  %vm282_vm3 = vcmp.ge.f32.partialorder %v278_v24, %v195_v16 }
  0x56   : > { %289 = vst [vmem:[%s876_s18 + $0x10] sm:$0xff] %v285_v21  ;;  %v286_v25 = vsel %vm282_vm3, %v183_v59, 0.0  ;;  %v491_v26 = vsel %vm282_vm3, 1.0, %v720_v10 }
  0x57   : > { %290 = vst [vmem:[%s876_s18 + $0x18] sm:$0xff] %v286_v25 }
  0x58   : > { %v303_v27 = vadd.f32 %v489_v20, %v488_v11 }
  0x5a   : > { %v304_v28 = vadd.f32 %v490_v22, %v303_v27 }
  0x5c   : > { %v305_v29 = vadd.f32 %v491_v26, %v304_v28 }
  0x5e   : > { %306 = vadd.xlane.f32.xlu0 %v305_v29 }
  0xd1   : > { %v307_v30 = vpop.xlane.xlu0 %306 }
  0xd2   : > { %v308_v31 = vrot.slane %v307_v30, 4 }
  0xd4   : > { %v309_v32 = vadd.f32 %v308_v31, %v307_v30 }
  0xd6   : > { %v310_v33 = vrot.slane %v309_v32, 2 }
  0xd8   : > { %v311_v34 = vadd.f32 %v310_v33, %v309_v32 }
  0xda   : > { %v312_v35 = vrot.slane %v311_v34, 1 }
  0xdc   : > { %v313_v36 = vadd.f32 %v312_v35, %v311_v34 }
  0xde   : > { %510 = vpush %v313_v36 }
 0x10f   : > { %s511_s21 = spop %510 }
 0x110   : > { %316 = sst [smem:[%s506_s20]] %s511_s21 }
 0x111 PF: > { %p494_p7 = scmp.ne.s32.totalorder %s776_s25, 1 }
 0x112   : > { %s495_s22 = sld [smem:[#allocation3 + $0x1]] (!%p494_p7)  ;;  %s507_s26 = scalar_lea.smem (!%p494_p7), [#allocation10], %s714_s1 }
 0x113   : > { %320 = sbr.rel (%p494_p7) target bundleno = 468 (0x1d4), region = 36  ;;  %s508_s28 = scalar_lea.smem (!%p494_p7), %s507_s26, 4294967295 [#allocation10] }
 0x118   : > { %v322_v37 = vstv %s495_s22 }
 0x119   : > { %vm323_vm4 = vcmp.lt.s32.totalorder %v858_v12, %v322_v37  ;;  %vm324_vm5 = vcmp.lt.s32.totalorder %v861_v17, %v322_v37  ;;  %vm325_vm6 = vcmp.lt.s32.totalorder %v863_v18, %v322_v37  ;;  %vm326_vm7 = vcmp.lt.s32.totalorder %v867_v23, %v322_v37 }
 0x11a   : > { %v327_v38 = vsel %vm323_vm4, %v488_v11, 0.0  ;;  %v328_v39 = vsel %vm324_vm5, %v489_v20, 0.0  ;;  %v329_v40 = vsel %vm325_vm6, %v490_v22, 0.0  ;;  %v330_v42 = vsel %vm326_vm7, %v491_v26, 0.0 }
 0x11b   : > { %v331_v41 = vadd.f32 %v328_v39, %v327_v38 }
 0x11d   : > { %v332_v43 = vadd.f32 %v331_v41, %v329_v40 }
 0x11f   : > { %v333_v44 = vadd.f32 %v332_v43, %v330_v42 }
 0x121   : > { %334 = vadd.xlane.f32.xlu0 %v333_v44 }
 0x194   : > { %v335_v45 = vpop.xlane.xlu0 %334 }
 0x195   : > { %v336_v46 = vrot.slane %v335_v45, 4 }
 0x197   : > { %v337_v47 = vadd.f32 %v336_v46, %v335_v45 }
 0x199   : > { %v338_v48 = vrot.slane %v337_v47, 2 }
 0x19b   : > { %v339_v12 = vadd.f32 %v338_v48, %v337_v47 }
 0x19d   : > { %v340_v49 = vrot.slane %v339_v12, 1 }
 0x19f   : > { %v341_v17 = vadd.f32 %v340_v49, %v339_v12 }
 0x1a1   : > { %512 = vpush %v341_v17 }
 0x1d2   : > { %s513_s29 = spop %512 }
 0x1d3   : > { %344 = sst [smem:[%s508_s28]] %s513_s29 }
 0x1d4 PF: > { %s357_s10 = scalar_lea.hbm %s936_s3, %s471_s15  ;;  %s358_s12 = sshll.u32 %s876_s18, 4  ;;  %s359_s12 = int_to_ptr.vmem [resolvable:$true] %s358_s12 }
 0x1d5   : > { %s360_s13 = sshll.u32 %s357_s10, 4  ;;  %s346_s14 = scalar_lea.sflag [#allocation7], %s843_s11  ;;  %s361_s13 = int_to_ptr.hbm [resolvable:$true] %s360_s13 }
 0x1d6   : > { %s642_s16 = sshra.s32 %s361_s13, 4  ;;  %s648_s20 = scalar_lea.hbm %s936_s3, 64  ;;  %s643_s16 = int_to_ptr.hbm [resolvable:$true] %s642_s16 }
 0x1d7   : > { %s644_s6 = scalar_lea.hbm %s643_s16, 32  ;;  %p649_p1 = scmp.lt.s32.totalorder %s643_s16, %s936_s3 }
 0x1d8   : > { %p645_p9 = scmp.ne.s32.totalorder %s643_s16, %s644_s6  ;;  %p650_p3 = scmp.lt.s32.totalorder %s648_s20, %s644_s6 }
 0x1da   : > { %p646_p13 = pnand %p645_p9, %p807_p11  ;;  %p651_p4 = por %p650_p3, %p649_p1 }
 0x1dc   : > { %p647_p0 = pneg %p646_p13 }
 0x1de   : > { %p652_p8 = pnand %p651_p4, %p647_p0 }
 0x1e0   : > { %655 = shalt.err (!%p652_p8)
}
 0x1e1   : > { %s721_s11 = smov 128   ;;  %s722_s15 = smov 8  }
 0x1e2   : > { %516 = dma.vmem_to_hbm [thread:$0]  (%p807_p11), %s359_s12, 512, %s361_s13, %s346_s14, %s721_s11, %s721_s11, %s722_s15  }
 0x1e3   : > { %s373_s28 = sshll.u32 %s937_s4, 4  ;;  %s723_s29 = smov [#allocation10]   ;;  %s374_s28 = int_to_ptr.hbm [resolvable:$true] %s373_s28 }
 0x1e4   : > { %p945_p5 = scmp.eq.s32.totalorder %s776_s25, 1 }
 0x1e6   : > { %518 = dma.smem_to_hbm (%p945_p5), %s723_s29, 16, %s374_s28, [#allocation8]  }
 0x1e7   : > { %p946_p10 = pmov %p945_p5 }
 0x1e8   : > { %p947_p2 = pmov %p945_p5 }
 0x1e9   : > { %693 = dma.done.wait (%p946_p10), [#allocation8], 16  }
 0x1ea   : > { %695 = vsyncadd (%p947_p2), [#allocation8], 4294967280 }
 0x1eb   : > { %382 = sfence }
 0x1ec PF: > { %s391_s7 = sand.u32 1, %s702_s23   ;;  %p948_p11 = scmp.ge.s32.totalorder %s714_s1, 2 }
 0x1ed   : > { %s392_s5 = scalar_lea.sflag [#allocation7], %s391_s7 }
 0x1ee   : > { %p527_p6 = pnand %p948_p11, %p811_p12 }
 0x1f0   : > { %p528_p7 = pneg %p527_p6 }
 0x1f2   : > { %697 = dma.done.wait (%p528_p7), %s392_s5, 512  }
 0x1f3   : > { %699 = vsyncadd (%p528_p7), %s392_s5, 4294966784  ;;  %p32_p9 = scmp.ge.s32.totalorder %s780_s27, 4   ;;  %s949_s23 = smov %s706_s0 }
 0x1f4   : > { %s950_s0 = smov %s710_s24  ;;  %s951_s24 = smov %s792_s30 }
 0x1f5   : > { %s952_s1 = smov %s780_s27  ;;  %34 = sbr.rel (!%p32_p9) target bundleno = 13 (0xd), region = 88 }
 0x1fa   :  { %398 = vsyncpa [#allocation6], 1 }
 0x1fb   :  { %400 = vsyncpa [#allocation6 + $0x1], 1 }
 0x1fc   :  { %401 = vsyncpa [#allocation7], 1 }
 0x1fd   :  { %403 = vsyncpa [#allocation7 + $0x1], 1 }
 0x1fe   :  { %404 = vsyncpa [#allocation8], 1 }
 0x1ff   :  { %406 = vsyncpa [#allocation8 + $0x1], 1 }

</bundles_post_ra>
